<compile_context>
chip_gen: v7x
topology: tpu7x:2x2x1
jax: 0.10.0
libtpu: 0.0.40
codegen_flags: <defaults>
</compile_context>

<pallas_src>
import functools

import numpy as np
import jax
import jax.numpy as jnp
from jax import lax
from jax.experimental import pallas as pl
from jax.experimental.pallas import tpu as pltpu


def fold_kernel(col_ref, x_ref, o_ref, *, k, H, W):
    """col_ref: (1, H*W) int32 column index per flat position.
    x_ref:   (tb, k*k*H*W) input block (native dtype), channel-major.
    o_ref:   (tb, H*W) output block (native dtype)."""
    HW = H * W
    pad = k // 2
    col = col_ref[...]                                     # (1, HW) int32
    flat = lax.broadcasted_iota(jnp.int32, (1, HW), 1)     # flat position index

    acc = None
    for ki in range(k):
        dy = ki - pad
        for kj in range(k):
            dx = kj - pad
            c = ki * k + kj
            # Lane-aligned slice (offset multiple of HW); cast per slice so at
            # most a couple of f32 planes are live at a time.
            xc = x_ref[:, c * HW:(c + 1) * HW].astype(jnp.float32)  # (tb, HW)
            if dy == 0 and dx == 0:
                term = xc
            else:
                s = dy * W + dx
                # Circular lane rotate (XLU) toward higher indices by s, then
                # zero out positions whose true source row/column is out of
                # range.  Masks are static per (dy, dx).
                xs = pltpu.roll(xc, shift=s % HW, axis=1)
                valid = ((flat >= s) & (flat < HW + s) &
                         (col >= dx) & (col < W + dx))
                term = jnp.where(valid, xs, 0.0)
            acc = term if acc is None else acc + term
    o_ref[...] = acc.astype(o_ref.dtype)


def fold(x, kernel_size=3, *, block_bytes=2 * 1024 * 1024):
    """x: (B, k*k, H, W) -> (B, 1, H, W), matching Fold.forward."""
    B, C, H, W = x.shape
    k = kernel_size
    assert k % 2 == 1, "only odd kernel_size supported (module default is 3)"
    assert C == k * k, "Fold expects kernel_size**2 input channels"
    HW = H * W

    # Free (metadata-only) reshape to the lane-dense flat layout.
    x_flat = x.reshape(B, C * HW)
    col_ids = jnp.asarray((np.arange(HW) % W).reshape(1, HW), dtype=np.int32)

    # Batch tile: stream ~block_bytes of input per grid step (memory-bound op;
    # bigger blocks amortize the ~0.35us/step overhead).  Keep tb a multiple
    # of 8 (sublane rule) unless it covers the whole batch; partial last block
    # is handled by Pallas (OOB reads are per-row garbage that only feeds
    # masked-out output rows, OOB writes are discarded).
    bytes_per_row = C * HW * x.dtype.itemsize
    tb_cap = max(8, min(512, block_bytes // max(1, bytes_per_row)))
    tb_cap = max(8, (tb_cap // 8) * 8)
    tb = B if B <= tb_cap else tb_cap
    nb = pl.cdiv(B, tb)

    in_bytes = B * C * HW * x.dtype.itemsize
    out_bytes = B * HW * x.dtype.itemsize

    out_flat = pl.pallas_call(
        functools.partial(fold_kernel, k=k, H=H, W=W),
        out_shape=jax.ShapeDtypeStruct((B, HW), x.dtype),
        grid_spec=pltpu.PrefetchScalarGridSpec(
            num_scalar_prefetch=0,
            grid=(nb,),
            in_specs=[
                pl.BlockSpec((1, HW), lambda i: (0, 0)),          # col ids
                pl.BlockSpec((tb, C * HW), lambda i: (i, 0)),     # input
            ],
            out_specs=pl.BlockSpec((tb, HW), lambda i: (i, 0)),
        ),
        compiler_params=pltpu.CompilerParams(
            # Batch axis shards across TensorCores on v7x megacore.
            dimension_semantics=("parallel",),
            # Blocks are ~5 MiB double-buffered; 32 MiB limit is safe on
            # v5e/v6e (128 MiB physical) and v7x (64 MiB/TC).
            vmem_limit_bytes=32 * 1024 * 1024),
        cost_estimate=pl.CostEstimate(
            flops=2 * B * C * HW,
            transcendentals=0,
            bytes_accessed=in_bytes + out_bytes + HW * 4),
    )(col_ids, x_flat)
    return out_flat.reshape(B, 1, H, W)


if __name__ == "__main__":
    B, k, H, W = 2, 3, 16, 16
    C = k * k
    key = jax.random.PRNGKey(0)
    x = jax.random.normal(key, (B, C, H, W), dtype=jnp.float32)

    out = fold(x, kernel_size=k)
    out = jax.block_until_ready(out)

    # Independent reference: conv_transpose2d with eye weights, stride 1,
    # padding k//2  ==  correlation with spatially flipped weights and
    # padding k-1-k//2.
    eye = jnp.eye(C, dtype=jnp.float32).reshape(C, 1, k, k)  # (in, out, kH, kW)
    w_corr = eye[:, 0, ::-1, ::-1][None]                     # (1, C, k, k) OIHW
    p = k - 1 - k // 2
    ref = lax.conv_general_dilated(
        x, w_corr, window_strides=(1, 1), padding=[(p, p), (p, p)],
        dimension_numbers=("NCHW", "OIHW", "NCHW"),
        precision=lax.Precision.HIGHEST)

    assert out.shape == (B, 1, H, W)
    assert jnp.allclose(out, ref, atol=1e-5, rtol=1e-5), float(
        jnp.max(jnp.abs(out - ref)))
    print("KERNEL_OK")
</pallas_src>

<mosaic_0001>
module attributes {stable_mosaic.version = 11 : i64} {
  func.func @fold_kernel(%arg0: i32, %arg1: memref<1x256xi32, #tpu.memory_space<vmem>>, %arg2: memref<2x2304xf32, #tpu.memory_space<vmem>>, %arg3: memref<2x256xf32, #tpu.memory_space<vmem>>) attributes {dimension_semantics = [#tpu.dimension_semantics<parallel>], iteration_bounds = array<i64: 1>, scalar_prefetch = 0 : i64, scratch_operands = 0 : i64, tpu.core_type = #tpu.core_type<tc>, window_params = [{pipeline_mode = #tpu.pipeline_mode<synchronous>, transform_indices = @transform_0, window_bounds = array<i64: 1, 256>}, {transform_indices = @transform_1, window_bounds = array<i64: 2, 2304>}, {transform_indices = @transform_2, window_bounds = array<i64: 2, 256>}]} {
    %c0 = arith.constant 0 : index
    %c0_0 = arith.constant 0 : index
    %0 = vector.load %arg1[%c0, %c0_0] : memref<1x256xi32, #tpu.memory_space<vmem>>, vector<1x256xi32>
    %1 = tpu.iota {dimensions = array<i32: 1>} : vector<1x256xi32>
    %c0_1 = arith.constant 0 : index
    %c0_2 = arith.constant 0 : index
    %2 = vector.load %arg2[%c0_1, %c0_2] : memref<2x2304xf32, #tpu.memory_space<vmem>>, vector<2x256xf32>
    %c239_i32 = arith.constant 239 : i32
    %3 = tpu.dynamic_rotate %2 by %c239_i32 dim 1 : vector<2x256xf32>, i32 -> vector<2x256xf32>
    %c-17_i32 = arith.constant -17 : i32
    %4 = vector.broadcast %c-17_i32 : i32 to vector<1x256xi32>
    %5 = arith.cmpi sge, %1, %4 : vector<1x256xi32>
    %c239_i32_3 = arith.constant 239 : i32
    %6 = vector.broadcast %c239_i32_3 : i32 to vector<1x256xi32>
    %7 = arith.cmpi slt, %1, %6 : vector<1x256xi32>
    %8 = arith.andi %5, %7 : vector<1x256xi1>
    %c-1_i32 = arith.constant -1 : i32
    %9 = vector.broadcast %c-1_i32 : i32 to vector<1x256xi32>
    %10 = arith.cmpi sge, %0, %9 : vector<1x256xi32>
    %11 = arith.andi %8, %10 : vector<1x256xi1>
    %c15_i32 = arith.constant 15 : i32
    %12 = vector.broadcast %c15_i32 : i32 to vector<1x256xi32>
    %13 = arith.cmpi slt, %0, %12 : vector<1x256xi32>
    %14 = arith.andi %11, %13 : vector<1x256xi1>
    %cst = arith.constant 0.000000e+00 : f32
    %15 = vector.shape_cast %14 : vector<1x256xi1> to vector<1x256xi1>
    %16 = vector.broadcast %15 : vector<1x256xi1> to vector<2x256xi1>
    %17 = vector.broadcast %cst : f32 to vector<2x256xf32>
    %18 = arith.select %16, %3, %17 : vector<2x256xi1>, vector<2x256xf32>
    %c0_4 = arith.constant 0 : index
    %c256 = arith.constant 256 : index
    %19 = vector.load %arg2[%c0_4, %c256] : memref<2x2304xf32, #tpu.memory_space<vmem>>, vector<2x256xf32>
    %c240_i32 = arith.constant 240 : i32
    %20 = tpu.dynamic_rotate %19 by %c240_i32 dim 1 : vector<2x256xf32>, i32 -> vector<2x256xf32>
    %c-16_i32 = arith.constant -16 : i32
    %21 = vector.broadcast %c-16_i32 : i32 to vector<1x256xi32>
    %22 = arith.cmpi sge, %1, %21 : vector<1x256xi32>
    %c240_i32_5 = arith.constant 240 : i32
    %23 = vector.broadcast %c240_i32_5 : i32 to vector<1x256xi32>
    %24 = arith.cmpi slt, %1, %23 : vector<1x256xi32>
    %25 = arith.andi %22, %24 : vector<1x256xi1>
    %c0_i32 = arith.constant 0 : i32
    %26 = vector.broadcast %c0_i32 : i32 to vector<1x256xi32>
    %27 = arith.cmpi sge, %0, %26 : vector<1x256xi32>
    %28 = arith.andi %25, %27 : vector<1x256xi1>
    %c16_i32 = arith.constant 16 : i32
    %29 = vector.broadcast %c16_i32 : i32 to vector<1x256xi32>
    %30 = arith.cmpi slt, %0, %29 : vector<1x256xi32>
    %31 = arith.andi %28, %30 : vector<1x256xi1>
    %cst_6 = arith.constant 0.000000e+00 : f32
    %32 = vector.shape_cast %31 : vector<1x256xi1> to vector<1x256xi1>
    %33 = vector.broadcast %32 : vector<1x256xi1> to vector<2x256xi1>
    %34 = vector.broadcast %cst_6 : f32 to vector<2x256xf32>
    %35 = arith.select %33, %20, %34 : vector<2x256xi1>, vector<2x256xf32>
    %36 = arith.addf %18, %35 : vector<2x256xf32>
    %c0_7 = arith.constant 0 : index
    %c512 = arith.constant 512 : index
    %37 = vector.load %arg2[%c0_7, %c512] : memref<2x2304xf32, #tpu.memory_space<vmem>>, vector<2x256xf32>
    %c241_i32 = arith.constant 241 : i32
    %38 = tpu.dynamic_rotate %37 by %c241_i32 dim 1 : vector<2x256xf32>, i32 -> vector<2x256xf32>
    %c-15_i32 = arith.constant -15 : i32
    %39 = vector.broadcast %c-15_i32 : i32 to vector<1x256xi32>
    %40 = arith.cmpi sge, %1, %39 : vector<1x256xi32>
    %c241_i32_8 = arith.constant 241 : i32
    %41 = vector.broadcast %c241_i32_8 : i32 to vector<1x256xi32>
    %42 = arith.cmpi slt, %1, %41 : vector<1x256xi32>
    %43 = arith.andi %40, %42 : vector<1x256xi1>
    %c1_i32 = arith.constant 1 : i32
    %44 = vector.broadcast %c1_i32 : i32 to vector<1x256xi32>
    %45 = arith.cmpi sge, %0, %44 : vector<1x256xi32>
    %46 = arith.andi %43, %45 : vector<1x256xi1>
    %c17_i32 = arith.constant 17 : i32
    %47 = vector.broadcast %c17_i32 : i32 to vector<1x256xi32>
    %48 = arith.cmpi slt, %0, %47 : vector<1x256xi32>
    %49 = arith.andi %46, %48 : vector<1x256xi1>
    %cst_9 = arith.constant 0.000000e+00 : f32
    %50 = vector.shape_cast %49 : vector<1x256xi1> to vector<1x256xi1>
    %51 = vector.broadcast %50 : vector<1x256xi1> to vector<2x256xi1>
    %52 = vector.broadcast %cst_9 : f32 to vector<2x256xf32>
    %53 = arith.select %51, %38, %52 : vector<2x256xi1>, vector<2x256xf32>
    %54 = arith.addf %36, %53 : vector<2x256xf32>
    %c0_10 = arith.constant 0 : index
    %c768 = arith.constant 768 : index
    %55 = vector.load %arg2[%c0_10, %c768] : memref<2x2304xf32, #tpu.memory_space<vmem>>, vector<2x256xf32>
    %c255_i32 = arith.constant 255 : i32
    %56 = tpu.dynamic_rotate %55 by %c255_i32 dim 1 : vector<2x256xf32>, i32 -> vector<2x256xf32>
    %c-1_i32_11 = arith.constant -1 : i32
    %57 = vector.broadcast %c-1_i32_11 : i32 to vector<1x256xi32>
    %58 = arith.cmpi sge, %1, %57 : vector<1x256xi32>
    %c255_i32_12 = arith.constant 255 : i32
    %59 = vector.broadcast %c255_i32_12 : i32 to vector<1x256xi32>
    %60 = arith.cmpi slt, %1, %59 : vector<1x256xi32>
    %61 = arith.andi %58, %60 : vector<1x256xi1>
    %c-1_i32_13 = arith.constant -1 : i32
    %62 = vector.broadcast %c-1_i32_13 : i32 to vector<1x256xi32>
    %63 = arith.cmpi sge, %0, %62 : vector<1x256xi32>
    %64 = arith.andi %61, %63 : vector<1x256xi1>
    %c15_i32_14 = arith.constant 15 : i32
    %65 = vector.broadcast %c15_i32_14 : i32 to vector<1x256xi32>
    %66 = arith.cmpi slt, %0, %65 : vector<1x256xi32>
    %67 = arith.andi %64, %66 : vector<1x256xi1>
    %cst_15 = arith.constant 0.000000e+00 : f32
    %68 = vector.shape_cast %67 : vector<1x256xi1> to vector<1x256xi1>
    %69 = vector.broadcast %68 : vector<1x256xi1> to vector<2x256xi1>
    %70 = vector.broadcast %cst_15 : f32 to vector<2x256xf32>
    %71 = arith.select %69, %56, %70 : vector<2x256xi1>, vector<2x256xf32>
    %72 = arith.addf %54, %71 : vector<2x256xf32>
    %c0_16 = arith.constant 0 : index
    %c1024 = arith.constant 1024 : index
    %73 = vector.load %arg2[%c0_16, %c1024] : memref<2x2304xf32, #tpu.memory_space<vmem>>, vector<2x256xf32>
    %74 = arith.addf %72, %73 : vector<2x256xf32>
    %c0_17 = arith.constant 0 : index
    %c1280 = arith.constant 1280 : index
    %75 = vector.load %arg2[%c0_17, %c1280] : memref<2x2304xf32, #tpu.memory_space<vmem>>, vector<2x256xf32>
    %c1_i32_18 = arith.constant 1 : i32
    %76 = tpu.dynamic_rotate %75 by %c1_i32_18 dim 1 : vector<2x256xf32>, i32 -> vector<2x256xf32>
    %c1_i32_19 = arith.constant 1 : i32
    %77 = vector.broadcast %c1_i32_19 : i32 to vector<1x256xi32>
    %78 = arith.cmpi sge, %1, %77 : vector<1x256xi32>
    %c257_i32 = arith.constant 257 : i32
    %79 = vector.broadcast %c257_i32 : i32 to vector<1x256xi32>
    %80 = arith.cmpi slt, %1, %79 : vector<1x256xi32>
    %81 = arith.andi %78, %80 : vector<1x256xi1>
    %c1_i32_20 = arith.constant 1 : i32
    %82 = vector.broadcast %c1_i32_20 : i32 to vector<1x256xi32>
    %83 = arith.cmpi sge, %0, %82 : vector<1x256xi32>
    %84 = arith.andi %81, %83 : vector<1x256xi1>
    %c17_i32_21 = arith.constant 17 : i32
    %85 = vector.broadcast %c17_i32_21 : i32 to vector<1x256xi32>
    %86 = arith.cmpi slt, %0, %85 : vector<1x256xi32>
    %87 = arith.andi %84, %86 : vector<1x256xi1>
    %cst_22 = arith.constant 0.000000e+00 : f32
    %88 = vector.shape_cast %87 : vector<1x256xi1> to vector<1x256xi1>
    %89 = vector.broadcast %88 : vector<1x256xi1> to vector<2x256xi1>
    %90 = vector.broadcast %cst_22 : f32 to vector<2x256xf32>
    %91 = arith.select %89, %76, %90 : vector<2x256xi1>, vector<2x256xf32>
    %92 = arith.addf %74, %91 : vector<2x256xf32>
    %c0_23 = arith.constant 0 : index
    %c1536 = arith.constant 1536 : index
    %93 = vector.load %arg2[%c0_23, %c1536] : memref<2x2304xf32, #tpu.memory_space<vmem>>, vector<2x256xf32>
    %c15_i32_24 = arith.constant 15 : i32
    %94 = tpu.dynamic_rotate %93 by %c15_i32_24 dim 1 : vector<2x256xf32>, i32 -> vector<2x256xf32>
    %c15_i32_25 = arith.constant 15 : i32
    %95 = vector.broadcast %c15_i32_25 : i32 to vector<1x256xi32>
    %96 = arith.cmpi sge, %1, %95 : vector<1x256xi32>
    %c271_i32 = arith.constant 271 : i32
    %97 = vector.broadcast %c271_i32 : i32 to vector<1x256xi32>
    %98 = arith.cmpi slt, %1, %97 : vector<1x256xi32>
    %99 = arith.andi %96, %98 : vector<1x256xi1>
    %c-1_i32_26 = arith.constant -1 : i32
    %100 = vector.broadcast %c-1_i32_26 : i32 to vector<1x256xi32>
    %101 = arith.cmpi sge, %0, %100 : vector<1x256xi32>
    %102 = arith.andi %99, %101 : vector<1x256xi1>
    %c15_i32_27 = arith.constant 15 : i32
    %103 = vector.broadcast %c15_i32_27 : i32 to vector<1x256xi32>
    %104 = arith.cmpi slt, %0, %103 : vector<1x256xi32>
    %105 = arith.andi %102, %104 : vector<1x256xi1>
    %cst_28 = arith.constant 0.000000e+00 : f32
    %106 = vector.shape_cast %105 : vector<1x256xi1> to vector<1x256xi1>
    %107 = vector.broadcast %106 : vector<1x256xi1> to vector<2x256xi1>
    %108 = vector.broadcast %cst_28 : f32 to vector<2x256xf32>
    %109 = arith.select %107, %94, %108 : vector<2x256xi1>, vector<2x256xf32>
    %110 = arith.addf %92, %109 : vector<2x256xf32>
    %c0_29 = arith.constant 0 : index
    %c1792 = arith.constant 1792 : index
    %111 = vector.load %arg2[%c0_29, %c1792] : memref<2x2304xf32, #tpu.memory_space<vmem>>, vector<2x256xf32>
    %c16_i32_30 = arith.constant 16 : i32
    %112 = tpu.dynamic_rotate %111 by %c16_i32_30 dim 1 : vector<2x256xf32>, i32 -> vector<2x256xf32>
    %c16_i32_31 = arith.constant 16 : i32
    %113 = vector.broadcast %c16_i32_31 : i32 to vector<1x256xi32>
    %114 = arith.cmpi sge, %1, %113 : vector<1x256xi32>
    %c272_i32 = arith.constant 272 : i32
    %115 = vector.broadcast %c272_i32 : i32 to vector<1x256xi32>
    %116 = arith.cmpi slt, %1, %115 : vector<1x256xi32>
    %117 = arith.andi %114, %116 : vector<1x256xi1>
    %c0_i32_32 = arith.constant 0 : i32
    %118 = vector.broadcast %c0_i32_32 : i32 to vector<1x256xi32>
    %119 = arith.cmpi sge, %0, %118 : vector<1x256xi32>
    %120 = arith.andi %117, %119 : vector<1x256xi1>
    %c16_i32_33 = arith.constant 16 : i32
    %121 = vector.broadcast %c16_i32_33 : i32 to vector<1x256xi32>
    %122 = arith.cmpi slt, %0, %121 : vector<1x256xi32>
    %123 = arith.andi %120, %122 : vector<1x256xi1>
    %cst_34 = arith.constant 0.000000e+00 : f32
    %124 = vector.shape_cast %123 : vector<1x256xi1> to vector<1x256xi1>
    %125 = vector.broadcast %124 : vector<1x256xi1> to vector<2x256xi1>
    %126 = vector.broadcast %cst_34 : f32 to vector<2x256xf32>
    %127 = arith.select %125, %112, %126 : vector<2x256xi1>, vector<2x256xf32>
    %128 = arith.addf %110, %127 : vector<2x256xf32>
    %c0_35 = arith.constant 0 : index
    %c2048 = arith.constant 2048 : index
    %129 = vector.load %arg2[%c0_35, %c2048] : memref<2x2304xf32, #tpu.memory_space<vmem>>, vector<2x256xf32>
    %c17_i32_36 = arith.constant 17 : i32
    %130 = tpu.dynamic_rotate %129 by %c17_i32_36 dim 1 : vector<2x256xf32>, i32 -> vector<2x256xf32>
    %c17_i32_37 = arith.constant 17 : i32
    %131 = vector.broadcast %c17_i32_37 : i32 to vector<1x256xi32>
    %132 = arith.cmpi sge, %1, %131 : vector<1x256xi32>
    %c273_i32 = arith.constant 273 : i32
    %133 = vector.broadcast %c273_i32 : i32 to vector<1x256xi32>
    %134 = arith.cmpi slt, %1, %133 : vector<1x256xi32>
    %135 = arith.andi %132, %134 : vector<1x256xi1>
    %c1_i32_38 = arith.constant 1 : i32
    %136 = vector.broadcast %c1_i32_38 : i32 to vector<1x256xi32>
    %137 = arith.cmpi sge, %0, %136 : vector<1x256xi32>
    %138 = arith.andi %135, %137 : vector<1x256xi1>
    %c17_i32_39 = arith.constant 17 : i32
    %139 = vector.broadcast %c17_i32_39 : i32 to vector<1x256xi32>
    %140 = arith.cmpi slt, %0, %139 : vector<1x256xi32>
    %141 = arith.andi %138, %140 : vector<1x256xi1>
    %cst_40 = arith.constant 0.000000e+00 : f32
    %142 = vector.shape_cast %141 : vector<1x256xi1> to vector<1x256xi1>
    %143 = vector.broadcast %142 : vector<1x256xi1> to vector<2x256xi1>
    %144 = vector.broadcast %cst_40 : f32 to vector<2x256xf32>
    %145 = arith.select %143, %130, %144 : vector<2x256xi1>, vector<2x256xf32>
    %146 = arith.addf %128, %145 : vector<2x256xf32>
    %c0_41 = arith.constant 0 : index
    %c0_42 = arith.constant 0 : index
    %147 = vector.load %arg3[%c0_41, %c0_42] : memref<2x256xf32, #tpu.memory_space<vmem>>, vector<2x256xf32>
    tpu.vector_store %arg3[%c0_41, %c0_42], %146 {strides = array<i32>} : memref<2x256xf32, #tpu.memory_space<vmem>>, vector<2x256xf32>,
    return
  }
  func.func @transform_0(%arg0: i32) -> (i32, i32) {
    %c0_i32 = arith.constant 0 : i32
    %c0_i32_0 = arith.constant 0 : i32
    %c0_i32_1 = arith.constant 0 : i32
    return %c0_i32, %c0_i32_0 : i32, i32
  }
  func.func @transform_1(%arg0: i32) -> (i32, i32) {
    %c0_i32 = arith.constant 0 : i32
    %c0_i32_0 = arith.constant 0 : i32
    return %arg0, %c0_i32 : i32, i32
  }
  func.func @transform_2(%arg0: i32) -> (i32, i32) {
    %c0_i32 = arith.constant 0 : i32
    %c0_i32_0 = arith.constant 0 : i32
    return %arg0, %c0_i32 : i32, i32
  }
}

</mosaic_0001>

<bundles_post_ra>
// kernel: tpu_custom_call.1
= control target key start
LH: loop header
LB: loop body
LE: loop exit
PB: predicated region body
PF: predicated region fallthrough
CT: control target
= control target key end

     0   :  { %7 = vsyncpa [#allocation3], 0  ;;  %s1000_s0 = inlined_call_operand.hbm [shape: s32[1,256], index: 0, kind: input, shape index: {}]   ;;  %s1001_s1 = inlined_call_operand.hbm [shape: f32[2,2304], index: 1, kind: input, shape index: {}]   ;;  %s1002_s2 = inlined_call_operand.hbm [shape: f32[2,256], index: 2, kind: output, shape index: {}]  }
   0x1   :  { %8 = vsyncpa [#allocation6], 0 }
   0x2   :  { %9 = vsyncpa [#allocation4], 0  ;;  %s606_s9 = smov [#allocation2]   ;;  %s607_s11 = smov [#allocation5]  }
   0x3   :  { %s16_s10 = sshll.u32 %s606_s9, 4  ;;  %s26_s12 = sshll.u32 %s607_s11, 4  ;;  %s17_s10 = int_to_ptr.vmem [resolvable:$true] %s16_s10  ;;  %s27_s12 = int_to_ptr.vmem [resolvable:$true] %s26_s12 }
   0x4   :  { %s534_s15 = scalar_lea.hbm %s1000_s0, 32 }
   0x5   :  { %p535_p0 = scmp.ne.s32.totalorder %s1000_s0, %s534_s15  ;;  %p538_p1 = scmp.lt.u32.totalorder %s534_s15, %s1000_s0 }
   0x7   :  { %p540_p2 = pnand %p538_p1, %p535_p0 }
   0x9   :  { %543 = shalt.err (!%p540_p2)
}
   0xa   :  { %s544_s20 = scalar_lea.vmem %s17_s10, 32  ;;  %p549_p4 = scmp.lt.s32.totalorder %s17_s10, %s17_s10 }
   0xb   :  { %p545_p3 = scmp.ne.s32.totalorder %s17_s10, %s544_s20  ;;  %p550_p5 = scmp.lt.s32.totalorder %s544_s20, %s544_s20 }
   0xd   :  { %p551_p6 = por %p550_p5, %p549_p4 }
   0xf   :  { %p552_p7 = pnand %p551_p6, %p545_p3 }
  0x11   :  { %555 = shalt.err (!%p552_p7)
}
  0x12   :  { %19 = dma.hbm_to_vmem [thread:$0]  %s1000_s0, 32, %s17_s10, [#allocation3]  }
  0x13   :  { %s556_s25 = scalar_lea.hbm %s1001_s1, 576 }
  0x14   :  { %p557_p8 = scmp.ne.s32.totalorder %s1001_s1, %s556_s25  ;;  %p560_p9 = scmp.lt.u32.totalorder %s556_s25, %s1001_s1 }
  0x16   :  { %p562_p10 = pnand %p560_p9, %p557_p8 }
  0x18   :  { %565 = shalt.err (!%p562_p10)
}
  0x19   :  { %s566_s30 = scalar_lea.vmem %s27_s12, 576  ;;  %p571_p12 = scmp.lt.s32.totalorder %s27_s12, %s27_s12 }
  0x1a   :  { %p567_p11 = scmp.ne.s32.totalorder %s27_s12, %s566_s30  ;;  %p572_p13 = scmp.lt.s32.totalorder %s566_s30, %s566_s30 }
  0x1c   :  { %p573_p0 = por %p572_p13, %p571_p12 }
  0x1e   :  { %p574_p1 = pnand %p573_p0, %p567_p11 }
  0x20   :  { %577 = shalt.err (!%p574_p1)
}
  0x21   :  { %29 = dma.hbm_to_vmem [thread:$0]  %s1001_s1, 576, %s27_s12, [#allocation6]  }
  0x22   :  { %600 = dma.done.wait [#allocation3], 32  }
  0x23   :  { %601 = vsyncadd [#allocation3], 4294967264 }
  0x24   :  { %602 = dma.done.wait [#allocation6], 576  }
  0x25   :  { %603 = vsyncadd [#allocation6], 4294966720  ;;  %v513_v0 = vld.sshfl [vmem:[#allocation5 + $0x4] sm:$0x33 pattern:$0x76325410]  ;;  %v37_v16 = vlaneseq }
  0x26   :  { %s608_s4 = smov 112   ;;  %v116_v1 = vcombine.high %v513_v0, %v513_v0  ;;  %v512_v2 = vld.sshfl [vmem:[#allocation5] sm:$0x33 pattern:$0x76325410]  ;;  %s609_s5 = smov 111  }
  0x27   :  { %119 = vrot.lane.b32.xlu1 %v513_v0, %s608_s4  ;;  %52 = vrot.lane.b32.xlu0 %v512_v2, %s609_s5  ;;  %v514_v3 = vld.sshfl [vmem:[#allocation5 + $0x8] sm:$0x33 pattern:$0x76325410]  ;;  %v49_v5 = vcombine.high %v512_v2, %v512_v2  ;;  %s610_s6 = smov 113   ;;  %s611_s1 = smov 127  }
  0x28   :  { %v185_v4 = vcombine.high %v514_v3, %v514_v3  ;;  %v515_v6 = vld.sshfl [vmem:[#allocation5 + $0xc] sm:$0x33 pattern:$0x76325410]  ;;  %s612_s7 = smov 1   ;;  %s613_s8 = smov 15  }
  0x29   :  { %v254_v7 = vcombine.high %v515_v6, %v515_v6  ;;  %v517_v8 = vld.sshfl [vmem:[#allocation5 + $0x14] sm:$0x33 pattern:$0x76325410]  ;;  %s614_s9 = smov 16   ;;  %s615_s10 = smov 17  }
  0x2a   :  { %v313_v9 = vcombine.high %v517_v8, %v517_v8  ;;  %v518_v10 = vld.sshfl [vmem:[#allocation5 + $0x18] sm:$0x33 pattern:$0x76325410]  ;;  %v36_v17 = vld [vmem:[#allocation2] sm:$0x3] }
  0x2b   :  { %121 = vrot.lane.b32.xlu1 %v116_v1, %s608_s4  ;;  %188 = vrot.lane.b32.xlu0 %v514_v3, %s610_s6  ;;  %v358_v11 = vcombine.high %v518_v10, %v518_v10  ;;  %v519_v12 = vld.sshfl [vmem:[#allocation5 + $0x1c] sm:$0x33 pattern:$0x76325410]  ;;  %v68_v18 = vshrl.u32 %v37_v16, 7  ;;  %vm132_vm0 = vcmp.ge.s32.totalorder %v36_v17, 0 }
  0x2c   :  { %v403_v13 = vcombine.high %v519_v12, %v519_v12  ;;  %v520_v14 = vld.sshfl [vmem:[#allocation5 + $0x20] sm:$0x33 pattern:$0x76325410]  ;;  %v657_v19 = vand.u32 127, %v37_v16  ;;  %vm146_vm1 = vcmp.lt.s32.totalorder %v36_v17, 16 }
  0x2d   :  { %v448_v15 = vcombine.high %v520_v14, %v520_v14  ;;  %v73_v20 = vsub.s32 1, %v68_v18  ;;  %v616_v21 = vmov 0   ;;  %v660_v23 = vsub.s32 0, %v68_v18  ;;  %s617_s11 = smov [#allocation7]  }
  0x2e   :  { %v133_v22 = vsel %vm132_vm0, 1, %v616_v21  ;;  %vm201_vm2 = vcmp.ge.s32.totalorder %v36_v17, 1  ;;  %v147_v24 = vsel %vm146_vm1, 1, %v616_v21  ;;  %vm215_vm3 = vcmp.lt.s32.totalorder %v36_v17, 17  ;;  %s502_s12 = sshll.u32 %s617_s11, 4  ;;  %s503_s12 = int_to_ptr.vmem [resolvable:$true] %s502_s12 }
  0x2f   :  { %190 = vrot.lane.b32.xlu1 %v185_v4, %s610_s6  ;;  %54 = vrot.lane.b32.xlu0 %v49_v5, %s609_s5  ;;  %v39_v25 = vadd.s32 128, %v657_v19  ;;  %v141_v26 = vrot.slane %v133_v22, %v73_v20  ;;  %vm65_vm4 = vcmp.ge.s32.totalorder %v36_v17, 4294967295  ;;  %v202_v27 = vsel %vm201_vm2, 1, %v616_v21  ;;  %s578_s13 = scalar_lea.vmem %s503_s12, 64  ;;  %p583_p3 = scmp.lt.s32.totalorder %s503_s12, %s503_s12 }
  0x30   :  { %v137_v28 = vrot.slane %v133_v22, %v660_v23  ;;  %v151_v29 = vrot.slane %v147_v24, %v660_v23  ;;  %v216_v30 = vsel %vm215_vm3, 1, %v616_v21  ;;  %vm79_vm5 = vcmp.lt.s32.totalorder %v36_v17, 15  ;;  %p579_p2 = scmp.ne.s32.totalorder %s503_s12, %s578_s13  ;;  %p584_p4 = scmp.lt.s32.totalorder %s578_s13, %s578_s13 }
  0x31   :  { %v155_v31 = vrot.slane %v147_v24, %v73_v20  ;;  %v66_v32 = vsel %vm65_vm4, 1, %v616_v21  ;;  %vm129_vm6 = vcmp.lt.s32.totalorder %v39_v25, 240  ;;  %vm669_vm7 = vcmp.ne.s32.totalorder %v141_v26, 0 }
  0x32   :  { %v1019_v33 = vmov 0  ;;  %v210_v34 = vrot.slane %v202_v27, %v73_v20  ;;  %v206_v35 = vrot.slane %v202_v27, %v660_v23  ;;  %v220_v36 = vrot.slane %v216_v30, %v660_v23  ;;  %vm686_vm10 = vmand %vm129_vm6, %vm669_vm7  ;;  %p585_p5 = por %p584_p4, %p583_p3 }
  0x33   :  { %259 = vrot.lane.b32.xlu1 %v254_v7, %s611_s1  ;;  %257 = vrot.lane.b32.xlu0 %v515_v6, %s611_s1  ;;  %v1020_v33 = vsel %vm669_vm7, 4294967295, %v1019_v33  ;;  %v80_v37 = vsel %vm79_vm5, 1, %v616_v21  ;;  %vm676_vm8 = vcmp.ne.s32.totalorder %v137_v28, 0  ;;  %v1021_v38 = vmov 0 }
  0x34   :  { %v1022_v38 = vsel %vm676_vm8, 4294967295, %v1021_v38  ;;  %vm680_vm9 = vcmp.ne.s32.totalorder %v151_v29, 0  ;;  %v1023_v39 = vmov 0  ;;  %v74_v40 = vrot.slane %v66_v32, %v73_v20  ;;  %p586_p6 = pnand %p585_p5, %p579_p2 }
  0x35   :  { %v1024_v39 = vsel %vm680_vm9, 4294967295, %v1023_v39  ;;  %vm690_vm11 = vcmp.ne.s32.totalorder %v155_v31, 0  ;;  %v1027_v42 = vmov 0  ;;  %v224_v43 = vrot.slane %v216_v30, %v73_v20 }
  0x36   :  { %v1028_v42 = vsel %vm690_vm11, 4294967295, %v1027_v42  ;;  %vm198_vm12 = vcmp.lt.s32.totalorder %v39_v25, 241  ;;  %vm694_vm13 = vcmp.ne.s32.totalorder %v210_v34, 0  ;;  %v1029_v44 = vmov 0 }
  0x37   :  { %318 = vrot.lane.b32.xlu1 %v313_v9, %s612_s7  ;;  %316 = vrot.lane.b32.xlu0 %v517_v8, %s612_s7  ;;  %v1030_v44 = vsel %vm694_vm13, 4294967295, %v1029_v44  ;;  %v70_v45 = vrot.slane %v66_v32, %v660_v23  ;;  %v84_v46 = vrot.slane %v80_v37, %v660_v23  ;;  %vm704_vm15 = vcmp.ne.s32.totalorder %v206_v35, 0  ;;  %vm722_vm4 = vmand %vm198_vm12, %vm694_vm13 }
  0x38   :  { %v1031_v47 = vmov 0  ;;  %vm708_vm0 = vcmp.ne.s32.totalorder %v220_v36, 0  ;;  %v1033_v48 = vmov 0  ;;  %v88_v49 = vrot.slane %v80_v37, %v73_v20 }
  0x39   :  { %v1032_v47 = vsel %vm704_vm15, 4294967295, %v1031_v47  ;;  %v1034_v48 = vsel %vm708_vm0, 4294967295, %v1033_v48  ;;  %vm62_vm2 = vcmp.lt.s32.totalorder %v39_v25, 239  ;;  %vm716_vm3 = vcmp.ne.s32.totalorder %v74_v40, 0 }
  0x3a   :  { %v1035_v50 = vmov 0  ;;  %vm726_vm5 = vcmp.ne.s32.totalorder %v224_v43, 0  ;;  %vm734_vm1 = vcmp.ne.s32.totalorder %v70_v45, 0  ;;  %vm738_vm14 = vcmp.ne.s32.totalorder %v84_v46, 0  ;;  %vm78_vm12 = vmand %vm62_vm2, %vm716_vm3 }
  0x3b   :  { %363 = vrot.lane.b32.xlu1 %v358_v11, %s613_s8  ;;  %361 = vrot.lane.b32.xlu0 %v518_v10, %s613_s8  ;;  %v1036_v50 = vsel %vm716_vm3, 4294967295, %v1035_v50  ;;  %v1043_v54 = vmov 0  ;;  %vm744_vm7 = vcmp.ne.s32.totalorder %v88_v49, 0  ;;  %vm228_vm6 = vmand %vm722_vm4, %vm726_vm5  ;;  %vm267_vm13 = vcmp.lt.s32.totalorder %v39_v25, 255 }
  0x3c   :  { %v1044_v54 = vsel %vm738_vm14, 4294967295, %v1043_v54  ;;  %vm91_vm0 = vmand %vm734_vm1, %vm738_vm14  ;;  %v230_v0 = vsel %vm228_vm6, 1, %v616_v21  ;;  %vm123_vm6 = vcmp.lt.s32.totalorder %v657_v19, 112  ;;  %v1055_v10 = vmov 0 }
  0x3d   :  { %vm92_vm15 = vmand %vm78_vm12, %vm744_vm7  ;;  %v93_v60 = vsel %vm91_vm0, 1, %v616_v21  ;;  %v238_v8 = vrot.slane %v230_v0, %v660_v23  ;;  %v1067_v22 = vmov 0  ;;  %v1069_v24 = vmov 0 }
  0x3e   :  { %vm760_vm2 = vmand %vm267_vm13, %vm716_vm3  ;;  %v94_v62 = vsel %vm92_vm15, 1, %v616_v21  ;;  %vm1051_vm13 = vnez %v1032_v47  ;;  %vm1052_vm3 = vnez %v1034_v48  ;;  %v98_v3 = vrot.slane %v93_v60, %v660_v23 }
  0x3f   :  { %408 = vrot.lane.b32.xlu1 %v403_v13, %s614_s9  ;;  %406 = vrot.lane.b32.xlu0 %v519_v12, %s614_s9  ;;  %vm1049_vm4 = vmand %vm676_vm8, %vm680_vm9  ;;  %vm368_vm15 = vcmp.ge.s32.totalorder %v657_v19, 15  ;;  %v102_v5 = vrot.slane %v94_v62, %v660_v23  ;;  %vm1072_vm0 = vnez %v1044_v54 }
  0x40   :  { %v160_v58 = vsel %vm1049_vm4, 1, %v616_v21  ;;  %vm1050_vm12 = vmand %vm686_vm10, %vm690_vm11  ;;  %vm323_vm4 = vcmp.ge.s32.totalorder %v657_v19, 1 }
  0x41   :  { %v161_v59 = vsel %vm1050_vm12, 1, %v616_v21  ;;  %vm1053_vm14 = vmand %vm1051_vm13, %vm1052_vm3  ;;  %v165_v1 = vrot.slane %v160_v58, %v660_v23  ;;  %vm844_vm12 = vcmp.eq.s32.totalorder %v238_v8, 1  ;;  %vm1075_vm3 = vcmp.lt.s32.totalorder %v657_v19, 111 }
  0x42   :  { %v229_v63 = vsel %vm1053_vm14, 1, %v616_v21  ;;  %vm273_vm10 = vmand %vm760_vm2, %vm744_vm7  ;;  %v169_v2 = vrot.slane %v161_v59, %v660_v23  ;;  %vm1054_vm14 = vnez %v1030_v44  ;;  %v1070_v24 = vsel %vm844_vm12, 4294967295, %v1069_v24 }
  0x43   :  { %453 = vrot.lane.b32.xlu1 %v448_v15, %s615_s10  ;;  %451 = vrot.lane.b32.xlu0 %v520_v14, %s615_s10  ;;  %v234_v7 = vrot.slane %v229_v63, %v660_v23  ;;  %v275_v9 = vsel %vm273_vm10, 1, %v616_v21  ;;  %vm805_vm2 = vmand %vm323_vm4, %vm1051_vm13  ;;  %vm818_vm8 = vcmp.eq.s32.totalorder %v165_v1, 1  ;;  %vm826_vm4 = vcmp.eq.s32.totalorder %v98_v3, 1 }
  0x44   :  { %v1056_v10 = vsel %vm805_vm2, 4294967295, %v1055_v10  ;;  %vm814_vm11 = vmand %vm368_vm15, %vm734_vm1  ;;  %vm822_vm10 = vcmp.eq.s32.totalorder %v169_v2, 1  ;;  %vm831_vm1 = vcmp.eq.s32.totalorder %v102_v5, 1  ;;  %v283_v20 = vrot.slane %v275_v9, %v660_v23 }
  0x45   :  { %vm840_vm9 = vcmp.eq.s32.totalorder %v234_v7, 1  ;;  %vm376_vm15 = vmand %vm814_vm11, %vm1072_vm0  ;;  %vm458_vm13 = vcmp.ge.s32.totalorder %v657_v19, 17  ;;  %vm1094_vm0 = vnez %v1032_v47 }
  0x46   :  { %v1068_v22 = vsel %vm840_vm9, 4294967295, %v1067_v22  ;;  %vm1073_vm9 = vcmp.lt.s32.totalorder %v657_v19, 113  ;;  %vm1076_vm2 = vmmov %vm1075_vm3  ;;  %v378_v49 = vsel %vm376_vm15, 1, %v616_v21 }
  0x47   :  { %vm1074_vm12 = vmmov %vm1073_vm9 }
  0x48   :  { %vm929_vm15 = vmand %vm458_vm13, %vm1094_vm0 }
  0x99   :  { %v120_v57 = vpop.permute.xlu1 %119  ;;  %v53_v61 = vpop.permute.xlu0 %52 }
  0x9d   :  { %v122_v4 = vpop.permute.xlu1 %121  ;;  %v189_v6 = vpop.permute.xlu0 %188 }
  0x9e   :  { %v124_v15 = vsel %vm123_vm6, %v120_v57, %v122_v4  ;;  %v125_v16 = vsel %vm123_vm6, %v122_v4, %v120_v57  ;;  %vm1071_vm6 = vmand %vm1054_vm14, %vm726_vm5  ;;  %vm1077_vm5 = vnez %v1036_v50 }
  0x9f   :  { %v334_v26 = vsel %vm1071_vm6, 1, %v616_v21  ;;  %vm377_vm14 = vmand %vm1077_vm5, %vm744_vm7  ;;  %v172_v31 = vsel %vm818_vm8, %v124_v15, 0.0  ;;  %v173_v32 = vsel %vm822_vm10, %v125_v16, 0.0  ;;  %vm887_vm7 = vcmp.eq.s32.totalorder %v283_v20, 1 }
  0xa0   :  { %vm1084_vm8 = vnez %v1056_v10  ;;  %vm1088_vm6 = vnez %v1070_v24  ;;  %v379_v50 = vsel %vm377_vm14, 1, %v616_v21  ;;  %vm1089_vm5 = vnez %v1028_v42  ;;  %v516_v42 = vld.sshfl [vmem:[#allocation5 + $0x10] sm:$0x33 pattern:$0x76325410] }
  0xa1   :  { %v191_v17 = vpop.permute.xlu1 %190  ;;  %v55_v25 = vpop.permute.xlu0 %54  ;;  %v342_v56 = vrot.slane %v334_v26, %v660_v23  ;;  %v387_v62 = vrot.slane %v379_v50, %v660_v23  ;;  %v299_v1 = vcombine.high %v516_v42, %v516_v42 }
  0xa2   :  { %v193_v27 = vsel %vm1073_vm9, %v189_v6, %v191_v17  ;;  %v194_v28 = vsel %vm1074_vm12, %v191_v17, %v189_v6  ;;  %v57_v29 = vsel %vm1075_vm3, %v53_v61, %v55_v25  ;;  %v58_v30 = vsel %vm1076_vm2, %v55_v25, %v53_v61 }
  0xa3   :  { %v105_v34 = vsel %vm826_vm4, %v57_v29, 0.0  ;;  %v106_v35 = vsel %vm831_vm1, %v58_v30, 0.0  ;;  %vm1078_vm9 = vnez %v1022_v38  ;;  %vm1079_vm3 = vcmp.ge.s32.totalorder %v657_v19, 16 }
  0xa4   :  { %vm883_vm2 = vmand %vm1079_vm3, %vm1078_vm9  ;;  %v174_v37 = vadd.f32 %v172_v31, %v105_v34  ;;  %v175_v40 = vadd.f32 %v173_v32, %v106_v35  ;;  %vm1085_vm12 = vnez %v1034_v48  ;;  %vm1087_vm1 = vnez %v1068_v22 }
  0xa5   :  { %v260_v41 = vpop.permute.xlu1 %259  ;;  %vm1086_vm10 = vmand %vm1084_vm8, %vm1085_vm12  ;;  %v241_v44 = vsel %vm1087_vm1, %v193_v27, 0.0  ;;  %v242_v45 = vsel %vm1088_vm6, %v194_v28, 0.0  ;;  %v258_v46 = vpop.permute.xlu0 %257  ;;  %vm1090_vm9 = vnez %v1020_v33  ;;  %vm1091_vm8 = vcmp.lt.s32.totalorder %v657_v19, 127 }
  0xa6   :  { %v333_v38 = vsel %vm1086_vm10, 1, %v616_v21  ;;  %vm422_vm3 = vmand %vm1090_vm9, %vm1089_vm5  ;;  %v243_v51 = vadd.f32 %v241_v44, %v174_v37  ;;  %v244_v52 = vadd.f32 %v242_v45, %v175_v40  ;;  %v262_v53 = vsel %vm1091_vm8, %v258_v46, %v260_v41 }
  0xa7   :  { %vm1092_vm10 = vmmov %vm1091_vm8  ;;  %vm1093_vm1 = vnez %v1024_v39  ;;  %v286_v54 = vsel %vm826_vm4, %v262_v53, 0.0  ;;  %v338_v58 = vrot.slane %v333_v38, %v660_v23  ;;  %v424_v59 = vsel %vm422_vm3, 1, %v616_v21 }
  0xa8   :  { %v263_v55 = vsel %vm1092_vm10, %v260_v41, %v258_v46  ;;  %vm421_vm11 = vmand %vm883_vm2, %vm1093_vm1  ;;  %vm320_vm4 = vcmp.lt.s32.totalorder %v657_v19, 1  ;;  %v383_v61 = vrot.slane %v378_v49, %v660_v23  ;;  %v288_v63 = vadd.f32 %v286_v54, %v243_v51 }
  0xa9   :  { %v287_v33 = vsel %vm887_vm7, %v263_v55, 0.0  ;;  %v319_v39 = vpop.permute.xlu1 %318  ;;  %v317_v60 = vpop.permute.xlu0 %316  ;;  %v423_v47 = vsel %vm421_vm11, 1, %v616_v21  ;;  %vm466_vm13 = vmand %vm929_vm15, %vm1085_vm12  ;;  %vm943_vm14 = vcmp.eq.s32.totalorder %v342_v56, 1  ;;  %vm365_vm2 = vcmp.lt.s32.totalorder %v657_v19, 15 }
  0xaa   :  { %v289_v0 = vadd.f32 %v287_v33, %v244_v52  ;;  %v432_v3 = vrot.slane %v424_v59, %v660_v23  ;;  %v321_v4 = vsel %vm320_vm4, %v317_v60, %v319_v39  ;;  %v322_v5 = vsel %vm320_vm4, %v319_v39, %v317_v60 }
  0xab   :  { %vm949_vm7 = vcmp.eq.s32.totalorder %v338_v58, 1  ;;  %v428_v48 = vrot.slane %v423_v47, %v660_v23  ;;  %vm954_vm6 = vcmp.eq.s32.totalorder %v383_v61, 1  ;;  %vm958_vm12 = vcmp.eq.s32.totalorder %v387_v62, 1 }
  0xac   :  { %v468_v11 = vsel %vm466_vm13, 1, %v616_v21  ;;  %v302_v12 = vadd.f32 %v516_v42, %v288_v63  ;;  %v303_v13 = vadd.f32 %v299_v1, %v289_v0  ;;  %v345_v16 = vsel %vm949_vm7, %v322_v5, 0.0 }
  0xad   :  { %v364_v7 = vpop.permute.xlu1 %363  ;;  %v362_v8 = vpop.permute.xlu0 %361  ;;  %v346_v17 = vsel %vm943_vm14, %v321_v4, 0.0  ;;  %vm410_vm5 = vcmp.lt.s32.totalorder %v657_v19, 16  ;;  %vm968_vm9 = vcmp.eq.s32.totalorder %v428_v48, 1  ;;  %vm972_vm3 = vcmp.eq.s32.totalorder %v432_v3, 1 }
  0xae   :  { %v366_v14 = vsel %vm365_vm2, %v362_v8, %v364_v7  ;;  %v367_v15 = vsel %vm365_vm2, %v364_v7, %v362_v8  ;;  %v473_v21 = vrot.slane %v468_v11, %v660_v23  ;;  %v347_v27 = vadd.f32 %v345_v16, %v302_v12 }
  0xaf   :  { %v390_v24 = vsel %vm954_vm6, %v367_v15, 0.0  ;;  %v391_v25 = vsel %vm958_vm12, %v366_v14, 0.0  ;;  %v348_v28 = vadd.f32 %v346_v17, %v303_v13  ;;  %vm455_vm8 = vcmp.lt.s32.totalorder %v657_v19, 17 }
  0xb0   :  { %v392_v23 = vadd.f32 %v390_v24, %v347_v27  ;;  %vm478_vm10 = vcmp.eq.s32.totalorder %v473_v21, 1 }
  0xb1   :  { %v409_v18 = vpop.permute.xlu1 %408  ;;  %v407_v26 = vpop.permute.xlu0 %406  ;;  %v393_v34 = vadd.f32 %v391_v25, %v348_v28 }
  0xb2   :  { %v411_v29 = vsel %vm410_vm5, %v407_v26, %v409_v18  ;;  %v412_v30 = vsel %vm410_vm5, %v409_v18, %v407_v26 }
  0xb3   :  { %v435_v31 = vsel %vm968_vm9, %v412_v30, 0.0  ;;  %v436_v32 = vsel %vm972_vm3, %v411_v29, 0.0 }
  0xb4   :  { %v437_v37 = vadd.f32 %v435_v31, %v392_v23  ;;  %v438_v40 = vadd.f32 %v436_v32, %v393_v34 }
  0xb5   :  { %v454_v35 = vpop.permute.xlu1 %453  ;;  %v452_v36 = vpop.permute.xlu0 %451 }
  0xb6   :  { %v456_v41 = vsel %vm455_vm8, %v452_v36, %v454_v35  ;;  %v457_v43 = vsel %vm455_vm8, %v454_v35, %v452_v36 }
  0xb7   :  { %v480_v38 = vsel %vm478_vm10, %v457_v43, 0.0  ;;  %v481_v44 = vsel %vm943_vm14, %v456_v41, 0.0 }
  0xb8   :  { %v482_v45 = vadd.f32 %v480_v38, %v437_v37  ;;  %v483_v46 = vadd.f32 %v481_v44, %v438_v40 }
  0xba   :  { %v486_v49 = vcombine.low %v482_v45, %v483_v46 }
  0xbc   :  { %521 = vst.sshfl [vmem:[#allocation7] sm:$0x33 pattern:$0x76325410] %v486_v49 }
  0xbd   :  { %589 = shalt.err (!%p586_p6)
}
  0xbe   :  { %s590_s16 = scalar_lea.hbm %s1002_s2, 64 }
  0xbf   :  { %p591_p7 = scmp.ne.s32.totalorder %s1002_s2, %s590_s16  ;;  %p594_p8 = scmp.lt.u32.totalorder %s590_s16, %s1002_s2 }
  0xc1   :  { %p596_p9 = pnand %p594_p8, %p591_p7 }
  0xc3   :  { %599 = shalt.err (!%p596_p9)
}
  0xc4   :  { %505 = dma.vmem_to_hbm [thread:$0]  %s503_s12, 64, %s1002_s2, [#allocation4]  }
  0xc5   :  { %604 = dma.done.wait [#allocation4], 64  }
  0xc6   :  { %605 = vsyncadd [#allocation4], 4294967232 }
  0xc7   :  { %509 = vsyncpa [#allocation3], 1 }
  0xc8   :  { %510 = vsyncpa [#allocation6], 1 }
  0xc9   :  { %511 = vsyncpa [#allocation4], 1 }

</bundles_post_ra>
